<compile_context>
chip_gen: v5e
topology: v5e:2x2
jax: 0.10.0
libtpu: 0.0.40
codegen_flags: <defaults>
</compile_context>

<pallas_src>
import functools

import jax
import jax.numpy as jnp
import numpy as np
from jax import lax
from jax.experimental import pallas as pl
from jax.experimental.pallas import tpu as pltpu

LANE = 128


def _ceil_to(x, m):
    return -(-x // m) * m


def project_points_kernel(*refs, use_T, two_inv_wm1, two_inv_hm1, eps):
    if use_T:
        pts_ref, k_ref, t_ref, grid_ref, depth_ref = refs
    else:
        pts_ref, k_ref, grid_ref, depth_ref = refs
        t_ref = None

    bi = pl.program_id(0)

    # pts_ref block: (1, c, tm, 128); per-channel slices are dense (tm, 128) slabs.
    px = pts_ref[0, 0].astype(jnp.float32)
    py = pts_ref[0, 1].astype(jnp.float32)
    pz = pts_ref[0, 2].astype(jnp.float32)

    if use_T:
        pw = pts_ref[0, 3].astype(jnp.float32)

        def t(i, j):
            return t_ref[bi, 4 * i + j].astype(jnp.float32)

        x = t(0, 0) * px + t(0, 1) * py + t(0, 2) * pz + t(0, 3) * pw
        y = t(1, 0) * px + t(1, 1) * py + t(1, 2) * pz + t(1, 3) * pw
        z = t(2, 0) * px + t(2, 1) * py + t(2, 2) * pz + t(2, 3) * pw
    else:
        x, y, z = px, py, pz

    depth = jnp.maximum(z, eps)                 # depth = z.clamp(min=eps)
    inv_d = 1.0 / jnp.maximum(depth, 0.1)       # project with z.clamp(min=0.1)

    def k(i, j):
        return k_ref[bi, 4 * i + j].astype(jnp.float32)

    # Folded: u = (K row . [x,y,z]) * inv_d ; gx = u * 2/(w-1) - 1
    u = (k(0, 0) * x + k(0, 1) * y + k(0, 2) * z) * inv_d
    v = (k(1, 0) * x + k(1, 1) * y + k(1, 2) * z) * inv_d

    grid_ref[0, 0] = (u * two_inv_wm1 - 1.0).astype(grid_ref.dtype)
    grid_ref[0, 1] = (v * two_inv_hm1 - 1.0).astype(grid_ref.dtype)
    depth_ref[0, 0] = depth.astype(depth_ref.dtype)


def _choose_tiling(n, b):
    """Pick (tm, rows) = (sublane rows per tile, padded total rows)."""
    rows_raw = -(-n // LANE)
    rows8 = _ceil_to(max(rows_raw, 1), 8)
    # ~1024 rows => 128K points, ~3.5 MiB in+out per step, ~7 MiB double-buffered VMEM.
    tm = min(1024, rows8)
    if b == 1 and rows8 > 8:
        # Split so the 'parallel' grid has >= 2 steps (megacore / both v7x TCs busy).
        tm = min(tm, _ceil_to(rows8 // 2, 8))
    tm = max(tm, 8)
    rows = _ceil_to(rows8, tm)
    return tm, rows


def project_points(pts, K, T=None, *, shape):
    """Pallas implementation of ProjectPoints.forward.

    pts: (b, 4, h*w) (or (b, 3, h*w) when T is None), K: (b, 4, 4), T: optional (b, 4, 4).
    Returns (grid (b, h, w, 2) in [-1, 1], depth (b, 1, h, w)), dtype == pts.dtype.
    """
    h, w = shape
    b, c, n = pts.shape
    assert n == h * w, "pts last dim must equal h*w"
    use_T = T is not None
    if use_T:
        assert c >= 4, "homogeneous (b, 4, h*w) points required when T is given"
    # TODO(synk): the original torch code with T=None and 4-row pts takes pts[:, 2:] (two
    # rows) and aliases it into a (2b,1,h,w) depth via .view(); that degenerate path is not
    # reproduced — the first three rows are always treated as (x, y, z).

    out_dtype = pts.dtype
    eps = float(jnp.finfo(pts.dtype).eps)
    wm1 = max(w - 1, 1)
    hm1 = max(h - 1, 1)

    tm, rows = _choose_tiling(n, b)
    n_pad = rows * LANE
    grid_n = rows // tm

    # Wrapper-side layout plumbing: pad the point axis and make it (rows, 128) dense.
    if n_pad != n:
        pts = jnp.pad(pts, ((0, 0), (0, 0), (0, n_pad - n)))
    pts4 = pts.reshape(b, c, rows, LANE)

    # 4x4 matrices flattened to (b, 16) SMEM rows (cheap scalar-indexed reads).
    K_flat = K.reshape(b, 16)
    inputs = [pts4, K_flat]
    in_specs = [
        pl.BlockSpec((1, c, tm, LANE), lambda bi, ni: (bi, 0, ni, 0)),
        pl.BlockSpec(memory_space=pltpu.MemorySpace.SMEM),
    ]
    if use_T:
        inputs.append(T.reshape(b, 16))
        in_specs.append(pl.BlockSpec(memory_space=pltpu.MemorySpace.SMEM))

    out_specs = (
        pl.BlockSpec((1, 2, tm, LANE), lambda bi, ni: (bi, 0, ni, 0)),
        pl.BlockSpec((1, 1, tm, LANE), lambda bi, ni: (bi, 0, ni, 0)),
    )
    out_shape = (
        jax.ShapeDtypeStruct((b, 2, rows, LANE), out_dtype),
        jax.ShapeDtypeStruct((b, 1, rows, LANE), out_dtype),
    )

    kernel = functools.partial(
        project_points_kernel,
        use_T=use_T,
        two_inv_wm1=2.0 / float(wm1),
        two_inv_hm1=2.0 / float(hm1),
        eps=eps,
    )

    itemsize = jnp.dtype(pts.dtype).itemsize
    out_itemsize = jnp.dtype(out_dtype).itemsize
    bytes_accessed = int(
        b * c * n_pad * itemsize
        + K.size * K.dtype.itemsize
        + (T.size * T.dtype.itemsize if use_T else 0)
        + b * 3 * n_pad * out_itemsize
    )
    flops_per_pt = 42 if use_T else 21
    cost = pl.CostEstimate(flops=flops_per_pt * b * n_pad, transcendentals=0,
                           bytes_accessed=bytes_accessed)

    grid_4d, depth_4d = pl.pallas_call(
        kernel,
        grid=(b, grid_n),
        in_specs=in_specs,
        out_specs=out_specs,
        out_shape=out_shape,
        compiler_params=pltpu.CompilerParams(
            dimension_semantics=("parallel", "parallel")),
        cost_estimate=cost,
    )(*inputs)

    # Layout plumbing back to the PyTorch contract: (b, h, w, 2) grid, (b, 1, h, w) depth.
    grid_flat = grid_4d.reshape(b, 2, n_pad)[:, :, :n]
    depth_flat = depth_4d.reshape(b, 1, n_pad)[:, :, :n]
    grid = grid_flat.reshape(b, 2, h, w).transpose(0, 2, 3, 1)
    depth = depth_flat.reshape(b, 1, h, w)
    return grid, depth


# ---- pure-JAX reference (mirrors the PyTorch code) for validation ----
def _ref(pts, K, T, h, w):
    if T is not None:
        pts = jnp.einsum("bij,bjn->bin", T, pts,
                         precision=lax.Precision.HIGHEST)[:, :3]
    else:
        pts = pts[:, :3]
    eps = jnp.finfo(pts.dtype).eps
    depth = jnp.maximum(pts[:, 2:3], eps)
    pix = jnp.einsum("bij,bjn->bin", K[:, :3, :3],
                     pts / jnp.maximum(depth, 0.1),
                     precision=lax.Precision.HIGHEST)[:, :2]
    b = pts.shape[0]
    depth = depth.reshape(b, 1, h, w)
    grid = pix.reshape(b, 2, h, w).transpose(0, 2, 3, 1)
    gx = grid[..., 0] / (w - 1)
    gy = grid[..., 1] / (h - 1)
    grid = (jnp.stack([gx, gy], axis=-1) - 0.5) * 2.0
    return grid, depth


def _make_K(b, h, w):
    return jnp.tile(
        jnp.array([[float(w), 0.0, w / 2.0, 0.0],
                   [0.0, float(h), h / 2.0, 0.0],
                   [0.0, 0.0, 1.0, 0.0],
                   [0.0, 0.0, 0.0, 1.0]], dtype=jnp.float32)[None],
        (b, 1, 1))


if __name__ == "__main__":
    key = jax.random.PRNGKey(0)
    kp, kt, kp2 = jax.random.split(key, 3)

    # --- test 1: small batch, with extrinsics T ---
    b, h, w = 2, 16, 16
    n = h * w
    pts_xyz = jax.random.normal(kp, (b, 3, n), dtype=jnp.float32)
    pts_xyz = pts_xyz.at[:, 2, :].add(2.0)            # push depths mostly positive
    pts_h = jnp.concatenate([pts_xyz, jnp.ones((b, 1, n), jnp.float32)], axis=1)
    K = _make_K(b, h, w)
    T = (jnp.eye(4, dtype=jnp.float32)[None]
         + 0.05 * jax.random.normal(kt, (b, 4, 4), dtype=jnp.float32))

    grid, depth = project_points(pts_h, K, T, shape=(h, w))
    jax.block_until_ready((grid, depth))
    rg, rd = _ref(pts_h, K, T, h, w)
    np.testing.assert_allclose(np.asarray(grid), np.asarray(rg), rtol=1e-4, atol=1e-4)
    np.testing.assert_allclose(np.asarray(depth), np.asarray(rd), rtol=1e-5, atol=1e-5)

    # --- test 2: same shapes, no T (3-row pointcloud, no wasted DMA) ---
    grid2, depth2 = project_points(pts_xyz, K, None, shape=(h, w))
    jax.block_until_ready((grid2, depth2))
    rg2, rd2 = _ref(pts_xyz, K, None, h, w)
    np.testing.assert_allclose(np.asarray(grid2), np.asarray(rg2), rtol=1e-4, atol=1e-4)
    np.testing.assert_allclose(np.asarray(depth2), np.asarray(rd2), rtol=1e-5, atol=1e-5)

    # --- test 3: b=1, larger point count -> exercises the multi-tile (>=2 grid steps) path ---
    b3, h3, w3 = 1, 32, 64
    n3 = h3 * w3
    pts3 = jax.random.normal(kp2, (b3, 3, n3), dtype=jnp.float32)
    pts3 = pts3.at[:, 2, :].add(2.0)
    pts3_h = jnp.concatenate([pts3, jnp.ones((b3, 1, n3), jnp.float32)], axis=1)
    K3 = _make_K(b3, h3, w3)
    T3 = jnp.eye(4, dtype=jnp.float32)[None]

    grid3, depth3 = project_points(pts3_h, K3, T3, shape=(h3, w3))
    jax.block_until_ready((grid3, depth3))
    rg3, rd3 = _ref(pts3_h, K3, T3, h3, w3)
    np.testing.assert_allclose(np.asarray(grid3), np.asarray(rg3), rtol=1e-4, atol=1e-4)
    np.testing.assert_allclose(np.asarray(depth3), np.asarray(rd3), rtol=1e-5, atol=1e-5)

    print("KERNEL_OK")
</pallas_src>

<mosaic_0001>
module attributes {stable_mosaic.version = 11 : i64} {
  func.func @project_points_kernel(%arg0: i32, %arg1: i32, %arg2: memref<1x4x8x128xf32, #tpu.memory_space<vmem>>, %arg3: memref<2x16xf32, #tpu.memory_space<smem>>, %arg4: memref<2x16xf32, #tpu.memory_space<smem>>, %arg5: memref<1x2x8x128xf32, #tpu.memory_space<vmem>>, %arg6: memref<1x1x8x128xf32, #tpu.memory_space<vmem>>) attributes {dimension_semantics = [#tpu.dimension_semantics<parallel>, #tpu.dimension_semantics<parallel>], iteration_bounds = array<i64: 2, 1>, scalar_prefetch = 0 : i64, scratch_operands = 0 : i64, tpu.core_type = #tpu.core_type<tc>, window_params = [{transform_indices = @transform_0, window_bounds = array<i64: 1, 4, 8, 128>}, {transform_indices = @transform_1, window_bounds = array<i64: 2, 16>}, {transform_indices = @transform_2, window_bounds = array<i64: 2, 16>}, {transform_indices = @transform_3, window_bounds = array<i64: 1, 2, 8, 128>}, {transform_indices = @transform_4, window_bounds = array<i64: 1, 1, 8, 128>}]} {
    %c0 = arith.constant 0 : index
    %c0_0 = arith.constant 0 : index
    %c0_1 = arith.constant 0 : index
    %c0_2 = arith.constant 0 : index
    %0 = vector.load %arg2[%c0, %c0_0, %c0_1, %c0_2] : memref<1x4x8x128xf32, #tpu.memory_space<vmem>>, vector<1x1x8x128xf32>
    %1 = vector.shape_cast %0 : vector<1x1x8x128xf32> to vector<8x128xf32>
    %c0_3 = arith.constant 0 : index
    %c1 = arith.constant 1 : index
    %c0_4 = arith.constant 0 : index
    %c0_5 = arith.constant 0 : index
    %2 = vector.load %arg2[%c0_3, %c1, %c0_4, %c0_5] : memref<1x4x8x128xf32, #tpu.memory_space<vmem>>, vector<1x1x8x128xf32>
    %3 = vector.shape_cast %2 : vector<1x1x8x128xf32> to vector<8x128xf32>
    %c0_6 = arith.constant 0 : index
    %c2 = arith.constant 2 : index
    %c0_7 = arith.constant 0 : index
    %c0_8 = arith.constant 0 : index
    %4 = vector.load %arg2[%c0_6, %c2, %c0_7, %c0_8] : memref<1x4x8x128xf32, #tpu.memory_space<vmem>>, vector<1x1x8x128xf32>
    %5 = vector.shape_cast %4 : vector<1x1x8x128xf32> to vector<8x128xf32>
    %c0_9 = arith.constant 0 : index
    %c3 = arith.constant 3 : index
    %c0_10 = arith.constant 0 : index
    %c0_11 = arith.constant 0 : index
    %6 = vector.load %arg2[%c0_9, %c3, %c0_10, %c0_11] : memref<1x4x8x128xf32, #tpu.memory_space<vmem>>, vector<1x1x8x128xf32>
    %7 = vector.shape_cast %6 : vector<1x1x8x128xf32> to vector<8x128xf32>
    %8 = arith.index_cast %arg0 : i32 to index
    %c0_12 = arith.constant 0 : index
    %9 = memref.load %arg4[%8, %c0_12] : memref<2x16xf32, #tpu.memory_space<smem>>
    %10 = vector.broadcast %9 : f32 to vector<8x128xf32>
    %11 = arith.mulf %10, %1 : vector<8x128xf32>
    %12 = arith.index_cast %arg0 : i32 to index
    %c1_13 = arith.constant 1 : index
    %13 = memref.load %arg4[%12, %c1_13] : memref<2x16xf32, #tpu.memory_space<smem>>
    %14 = vector.broadcast %13 : f32 to vector<8x128xf32>
    %15 = arith.mulf %14, %3 : vector<8x128xf32>
    %16 = arith.addf %11, %15 : vector<8x128xf32>
    %17 = arith.index_cast %arg0 : i32 to index
    %c2_14 = arith.constant 2 : index
    %18 = memref.load %arg4[%17, %c2_14] : memref<2x16xf32, #tpu.memory_space<smem>>
    %19 = vector.broadcast %18 : f32 to vector<8x128xf32>
    %20 = arith.mulf %19, %5 : vector<8x128xf32>
    %21 = arith.addf %16, %20 : vector<8x128xf32>
    %22 = arith.index_cast %arg0 : i32 to index
    %c3_15 = arith.constant 3 : index
    %23 = memref.load %arg4[%22, %c3_15] : memref<2x16xf32, #tpu.memory_space<smem>>
    %24 = vector.broadcast %23 : f32 to vector<8x128xf32>
    %25 = arith.mulf %24, %7 : vector<8x128xf32>
    %26 = arith.addf %21, %25 : vector<8x128xf32>
    %27 = arith.index_cast %arg0 : i32 to index
    %c4 = arith.constant 4 : index
    %28 = memref.load %arg4[%27, %c4] : memref<2x16xf32, #tpu.memory_space<smem>>
    %29 = vector.broadcast %28 : f32 to vector<8x128xf32>
    %30 = arith.mulf %29, %1 : vector<8x128xf32>
    %31 = arith.index_cast %arg0 : i32 to index
    %c5 = arith.constant 5 : index
    %32 = memref.load %arg4[%31, %c5] : memref<2x16xf32, #tpu.memory_space<smem>>
    %33 = vector.broadcast %32 : f32 to vector<8x128xf32>
    %34 = arith.mulf %33, %3 : vector<8x128xf32>
    %35 = arith.addf %30, %34 : vector<8x128xf32>
    %36 = arith.index_cast %arg0 : i32 to index
    %c6 = arith.constant 6 : index
    %37 = memref.load %arg4[%36, %c6] : memref<2x16xf32, #tpu.memory_space<smem>>
    %38 = vector.broadcast %37 : f32 to vector<8x128xf32>
    %39 = arith.mulf %38, %5 : vector<8x128xf32>
    %40 = arith.addf %35, %39 : vector<8x128xf32>
    %41 = arith.index_cast %arg0 : i32 to index
    %c7 = arith.constant 7 : index
    %42 = memref.load %arg4[%41, %c7] : memref<2x16xf32, #tpu.memory_space<smem>>
    %43 = vector.broadcast %42 : f32 to vector<8x128xf32>
    %44 = arith.mulf %43, %7 : vector<8x128xf32>
    %45 = arith.addf %40, %44 : vector<8x128xf32>
    %46 = arith.index_cast %arg0 : i32 to index
    %c8 = arith.constant 8 : index
    %47 = memref.load %arg4[%46, %c8] : memref<2x16xf32, #tpu.memory_space<smem>>
    %48 = vector.broadcast %47 : f32 to vector<8x128xf32>
    %49 = arith.mulf %48, %1 : vector<8x128xf32>
    %50 = arith.index_cast %arg0 : i32 to index
    %c9 = arith.constant 9 : index
    %51 = memref.load %arg4[%50, %c9] : memref<2x16xf32, #tpu.memory_space<smem>>
    %52 = vector.broadcast %51 : f32 to vector<8x128xf32>
    %53 = arith.mulf %52, %3 : vector<8x128xf32>
    %54 = arith.addf %49, %53 : vector<8x128xf32>
    %55 = arith.index_cast %arg0 : i32 to index
    %c10 = arith.constant 10 : index
    %56 = memref.load %arg4[%55, %c10] : memref<2x16xf32, #tpu.memory_space<smem>>
    %57 = vector.broadcast %56 : f32 to vector<8x128xf32>
    %58 = arith.mulf %57, %5 : vector<8x128xf32>
    %59 = arith.addf %54, %58 : vector<8x128xf32>
    %60 = arith.index_cast %arg0 : i32 to index
    %c11 = arith.constant 11 : index
    %61 = memref.load %arg4[%60, %c11] : memref<2x16xf32, #tpu.memory_space<smem>>
    %62 = vector.broadcast %61 : f32 to vector<8x128xf32>
    %63 = arith.mulf %62, %7 : vector<8x128xf32>
    %64 = arith.addf %59, %63 : vector<8x128xf32>
    %cst = arith.constant 1.1920929E-7 : f32
    %65 = vector.broadcast %cst : f32 to vector<8x128xf32>
    %66 = arith.maximumf %64, %65 : vector<8x128xf32>
    %cst_16 = arith.constant 1.000000e-01 : f32
    %67 = vector.broadcast %cst_16 : f32 to vector<8x128xf32>
    %68 = arith.maximumf %66, %67 : vector<8x128xf32>
    %cst_17 = arith.constant 1.000000e+00 : f32
    %69 = vector.broadcast %cst_17 : f32 to vector<8x128xf32>
    %70 = arith.divf %69, %68 : vector<8x128xf32>
    %71 = arith.index_cast %arg0 : i32 to index
    %c0_18 = arith.constant 0 : index
    %72 = memref.load %arg3[%71, %c0_18] : memref<2x16xf32, #tpu.memory_space<smem>>
    %73 = vector.broadcast %72 : f32 to vector<8x128xf32>
    %74 = arith.mulf %73, %26 : vector<8x128xf32>
    %75 = arith.index_cast %arg0 : i32 to index
    %c1_19 = arith.constant 1 : index
    %76 = memref.load %arg3[%75, %c1_19] : memref<2x16xf32, #tpu.memory_space<smem>>
    %77 = vector.broadcast %76 : f32 to vector<8x128xf32>
    %78 = arith.mulf %77, %45 : vector<8x128xf32>
    %79 = arith.addf %74, %78 : vector<8x128xf32>
    %80 = arith.index_cast %arg0 : i32 to index
    %c2_20 = arith.constant 2 : index
    %81 = memref.load %arg3[%80, %c2_20] : memref<2x16xf32, #tpu.memory_space<smem>>
    %82 = vector.broadcast %81 : f32 to vector<8x128xf32>
    %83 = arith.mulf %82, %64 : vector<8x128xf32>
    %84 = arith.addf %79, %83 : vector<8x128xf32>
    %85 = arith.mulf %84, %70 : vector<8x128xf32>
    %86 = arith.index_cast %arg0 : i32 to index
    %c4_21 = arith.constant 4 : index
    %87 = memref.load %arg3[%86, %c4_21] : memref<2x16xf32, #tpu.memory_space<smem>>
    %88 = vector.broadcast %87 : f32 to vector<8x128xf32>
    %89 = arith.mulf %88, %26 : vector<8x128xf32>
    %90 = arith.index_cast %arg0 : i32 to index
    %c5_22 = arith.constant 5 : index
    %91 = memref.load %arg3[%90, %c5_22] : memref<2x16xf32, #tpu.memory_space<smem>>
    %92 = vector.broadcast %91 : f32 to vector<8x128xf32>
    %93 = arith.mulf %92, %45 : vector<8x128xf32>
    %94 = arith.addf %89, %93 : vector<8x128xf32>
    %95 = arith.index_cast %arg0 : i32 to index
    %c6_23 = arith.constant 6 : index
    %96 = memref.load %arg3[%95, %c6_23] : memref<2x16xf32, #tpu.memory_space<smem>>
    %97 = vector.broadcast %96 : f32 to vector<8x128xf32>
    %98 = arith.mulf %97, %64 : vector<8x128xf32>
    %99 = arith.addf %94, %98 : vector<8x128xf32>
    %100 = arith.mulf %99, %70 : vector<8x128xf32>
    %cst_24 = arith.constant 0.13333334 : f32
    %101 = vector.broadcast %cst_24 : f32 to vector<8x128xf32>
    %102 = arith.mulf %85, %101 : vector<8x128xf32>
    %cst_25 = arith.constant 1.000000e+00 : f32
    %103 = vector.broadcast %cst_25 : f32 to vector<8x128xf32>
    %104 = arith.subf %102, %103 : vector<8x128xf32>
    %c0_26 = arith.constant 0 : index
    %c0_27 = arith.constant 0 : index
    %c0_28 = arith.constant 0 : index
    %c0_29 = arith.constant 0 : index
    %105 = vector.load %arg5[%c0_26, %c0_27, %c0_28, %c0_29] : memref<1x2x8x128xf32, #tpu.memory_space<vmem>>, vector<1x1x8x128xf32>
    %106 = vector.shape_cast %105 : vector<1x1x8x128xf32> to vector<8x128xf32>
    %107 = vector.shape_cast %104 : vector<8x128xf32> to vector<1x1x8x128xf32>
    tpu.vector_store %arg5[%c0_26, %c0_27, %c0_28, %c0_29], %107 {strides = array<i32>} : memref<1x2x8x128xf32, #tpu.memory_space<vmem>>, vector<1x1x8x128xf32>,
    %cst_30 = arith.constant 0.13333334 : f32
    %108 = vector.broadcast %cst_30 : f32 to vector<8x128xf32>
    %109 = arith.mulf %100, %108 : vector<8x128xf32>
    %cst_31 = arith.constant 1.000000e+00 : f32
    %110 = vector.broadcast %cst_31 : f32 to vector<8x128xf32>
    %111 = arith.subf %109, %110 : vector<8x128xf32>
    %c0_32 = arith.constant 0 : index
    %c1_33 = arith.constant 1 : index
    %c0_34 = arith.constant 0 : index
    %c0_35 = arith.constant 0 : index
    %112 = vector.load %arg5[%c0_32, %c1_33, %c0_34, %c0_35] : memref<1x2x8x128xf32, #tpu.memory_space<vmem>>, vector<1x1x8x128xf32>
    %113 = vector.shape_cast %112 : vector<1x1x8x128xf32> to vector<8x128xf32>
    %114 = vector.shape_cast %111 : vector<8x128xf32> to vector<1x1x8x128xf32>
    tpu.vector_store %arg5[%c0_32, %c1_33, %c0_34, %c0_35], %114 {strides = array<i32>} : memref<1x2x8x128xf32, #tpu.memory_space<vmem>>, vector<1x1x8x128xf32>,
    %c0_36 = arith.constant 0 : index
    %c0_37 = arith.constant 0 : index
    %c0_38 = arith.constant 0 : index
    %c0_39 = arith.constant 0 : index
    %115 = vector.load %arg6[%c0_36, %c0_37, %c0_38, %c0_39] : memref<1x1x8x128xf32, #tpu.memory_space<vmem>>, vector<1x1x8x128xf32>
    %116 = vector.shape_cast %115 : vector<1x1x8x128xf32> to vector<8x128xf32>
    %117 = vector.shape_cast %66 : vector<8x128xf32> to vector<1x1x8x128xf32>
    tpu.vector_store %arg6[%c0_36, %c0_37, %c0_38, %c0_39], %117 {strides = array<i32>} : memref<1x1x8x128xf32, #tpu.memory_space<vmem>>, vector<1x1x8x128xf32>,
    return
  }
  func.func @transform_0(%arg0: i32, %arg1: i32) -> (i32, i32, i32, i32) {
    %c0_i32 = arith.constant 0 : i32
    %c0_i32_0 = arith.constant 0 : i32
    %c0_i32_1 = arith.constant 0 : i32
    return %arg0, %c0_i32, %arg1, %c0_i32_0 : i32, i32, i32, i32
  }
  func.func @transform_1(%arg0: i32, %arg1: i32) -> (i32, i32) {
    %c0_i32 = arith.constant 0 : i32
    %c0_i32_0 = arith.constant 0 : i32
    %c0_i32_1 = arith.constant 0 : i32
    return %c0_i32, %c0_i32_0 : i32, i32
  }
  func.func @transform_2(%arg0: i32, %arg1: i32) -> (i32, i32) {
    %c0_i32 = arith.constant 0 : i32
    %c0_i32_0 = arith.constant 0 : i32
    %c0_i32_1 = arith.constant 0 : i32
    return %c0_i32, %c0_i32_0 : i32, i32
  }
  func.func @transform_3(%arg0: i32, %arg1: i32) -> (i32, i32, i32, i32) {
    %c0_i32 = arith.constant 0 : i32
    %c0_i32_0 = arith.constant 0 : i32
    %c0_i32_1 = arith.constant 0 : i32
    return %arg0, %c0_i32, %arg1, %c0_i32_0 : i32, i32, i32, i32
  }
  func.func @transform_4(%arg0: i32, %arg1: i32) -> (i32, i32, i32, i32) {
    %c0_i32 = arith.constant 0 : i32
    %c0_i32_0 = arith.constant 0 : i32
    %c0_i32_1 = arith.constant 0 : i32
    return %arg0, %c0_i32, %arg1, %c0_i32_0 : i32, i32, i32, i32
  }
}

</mosaic_0001>

<bundles_post_ra>
// kernel: tpu_custom_call.1
= control target key start
LH: loop header
LB: loop body
LE: loop exit
PB: predicated region body
PF: predicated region fallthrough
CT: control target
= control target key end

     0   :  { %s1156_s0 = inlined_call_operand.hbm [shape: f32[2,4,8,128], index: 0, kind: input, shape index: {}]   ;;  %s1157_s1 = inlined_call_operand.hbm [shape: f32[2,16], index: 1, kind: input, shape index: {}]   ;;  %s1158_s2 = inlined_call_operand.hbm [shape: f32[2,16], index: 2, kind: input, shape index: {}]   ;;  %s1159_s3 = inlined_call_operand.hbm [shape: f32[2,2,8,128], index: 3, kind: output, shape index: {0}]   ;;  %s1160_s4 = inlined_call_operand.hbm [shape: f32[2,1,8,128], index: 4, kind: output, shape index: {1}]  }
   0x1   :  { %1167 = sst [smem:[#allocation19_spill]] %s1156_s0 }
   0x2   :  { %1168 = sst [smem:[#allocation20_spill]] %s1157_s1 }
   0x3   :  { %1169 = sst [smem:[#allocation21_spill]] %s1158_s2 }
   0x4   :  { %10 = vsyncpa [#allocation3], 0 }
   0x5   :  { %12 = vsyncpa [#allocation3 + $0x1], 0 }
   0x6   :  { %13 = vsyncpa [#allocation5], 0 }
   0x7   :  { %14 = vsyncpa [#allocation8], 0 }
   0x8   :  { %15 = vsyncpa [#allocation4], 0 }
   0x9   :  { %17 = vsyncpa [#allocation4 + $0x1], 0 }
   0xa   :  { %18 = vsyncpa [#allocation11], 0 }
   0xb   :  { %20 = vsyncpa [#allocation11 + $0x1], 0  ;;  %s906_s15 = smov 0   ;;  %s908_s16 = smov 0  }
   0xc   :  { %s910_s17 = smov 0   ;;  %s912_s18 = smov 0  }
   0xd   :  { %s914_s19 = smov 0   ;;  %s916_s20 = smov 0  }
   0xe LB: > { %1170 = sst [smem:[#allocation17_spill]] %s869_s19  ;;  %s566_s21 = sadd.s32 4294967295, %s873_s20   ;;  %s873_s20 = sphi %s916_s20, %s26_s20   ;;  %s869_s19 = sphi %s914_s19, %s1187_s19   ;;  %s865_s18 = sphi %s912_s18, %s1186_s18   ;;  %s861_s17 = sphi %s910_s17, %s1190_s17   ;;  %s857_s16 = sphi %s908_s16, %s1189_s16   ;;  %s853_s15 = sphi %s906_s15, %s1188_s15  }
   0xf   : > { %s567_s22 = sadd.s32 4294967294, %s873_s20   ;;  %s47_s23 = sadd.s32 1, %s861_s17 }
  0x10   : > { %p54_p0 = scmp.ne.s32.totalorder %s861_s17, %s857_s16  ;;  %p55_p1 = scmp.eq.s32.totalorder %s873_s20, 0 }
  0x11   : > { %p60_p2 = scmp.ne.s32.totalorder %s857_s16, %s853_s15  ;;  %p944_p3 = scmp.eq.s32.totalorder %s566_s21, 0 }
  0x12   : > { %p128_p4 = scmp.eq.s32.totalorder %s566_s21, 1  ;;  %p948_p5 = por %p55_p1, %p54_p0 }
  0x13   : > { %p134_p6 = scmp.eq.s32.totalorder %s567_s22, 1  ;;  %p954_p7 = por %p944_p3, %p60_p2 }
  0x14   : > { %p958_p8 = por %p128_p4, %p54_p0  ;;  %p568_p10 = scmp.ge.s32.totalorder %s873_s20, 1 }
  0x15   : > { %p962_p9 = por %p134_p6, %p60_p2  ;;  %p169_p11 = scmp.lt.s32.totalorder %s873_s20, 3 }
  0x16   : > { %s1176_s1 = sld [smem:[#allocation20_spill]]  ;;  %p571_p13 = scmp.ge.s32.totalorder %s873_s20, 2 }
  0x17   : > { %p971_p12 = pnand %p568_p10, %p169_p11  ;;  %p631_p0 = scmp.lt.s32.totalorder %s873_s20, 2 }
  0x18   : > { %s1178_s2 = sld [smem:[#allocation21_spill]]  ;;  %s875_s11 = smov [#allocation6]  }
  0x19   : > { %p611_p1 = pneg %p971_p12  ;;  %p984_p2 = pnand %p631_p0, %p948_p5 }
  0x1a   : > { %s876_s12 = smov [#allocation7]   ;;  %s38_s13 = sadd.s32 1, %s869_s19 }
  0x1b   : > { %p612_p4 = pnand %p611_p1, %p944_p3  ;;  %s202_s14 = sand.u32 1, %s861_s17  }
  0x1c   : > { %s181_s5 = sshll.u32 %s1176_s1, 4  ;;  %p40_p6 = scmp.ge.s32.totalorder %s38_s13, 2  ;;  %s182_s5 = int_to_ptr.hbm [resolvable:$true] %s181_s5 }
  0x1d   : > { %614 = dma.hbm_to_smem (!%p612_p4), %s182_s5, 32, %s875_s11, [#allocation5]  }
  0x1e   : > { %s191_s9 = sshll.u32 %s1178_s2, 4  ;;  %s572_s21 = sshll.u32 %s202_s14, 5  ;;  %s192_s9 = int_to_ptr.hbm [resolvable:$true] %s191_s9 }
  0x1f   : > { %617 = dma.hbm_to_smem (!%p612_p4), %s192_s9, 32, %s876_s12, [#allocation8]  }
  0x20   : > { %s595_s22 = sshll.u32 %s869_s19, 5  ;;  %s1192_s13 = smov (%p40_p6, %s38_s13), 0 }
  0x21   : > { %1180 = sst [smem:[#allocation18_spill]] %s1192_s13  ;;  %s42_s7 = ssub.s32 %s869_s19, %s1192_s13 }
  0x22   : > { %s1181_s0 = sld [smem:[#allocation19_spill]]  ;;  %p45_p5 = scmp.eq.s32.totalorder %s42_s7, 0 }
  0x23   : > { %s206_s5 = scalar_lea.vmem [#allocation2], %s572_s21  ;;  %s203_s12 = scalar_lea.sflag [#allocation3], %s202_s14 }
  0x24   : > { %s215_s11 = sshll.u32 %s206_s5, 4  ;;  %s877_s1 = smov 128   ;;  %s216_s11 = int_to_ptr.vmem [resolvable:$true] %s215_s11 }
  0x25   : > { %s1003_s9 = scalar_select %p45_p5, %s861_s17, %s47_s23  }
  0x26   : > { %s878_s2 = smov 8   ;;  %227 = sbr.rel (%p971_p12) target bundleno = 111 (0x6f), region = 32 }
  0x28   : > { %s212_s30 = scalar_lea.hbm %s1181_s0, %s595_s22  ;;  %s1010_s22 = sand.u32 (!%p971_p12), 1, %s857_s16  }
  0x29   : > { %s213_s8 = sshll.u32 %s212_s30, 4  ;;  %s576_s21 = sshll.u32 (!%p971_p12), %s1010_s22, 5  ;;  %s214_s8 = int_to_ptr.hbm [resolvable:$true] %s213_s8 }
  0x2a   : > { %621 = dma.hbm_to_vmem [thread:$0]  (!%p984_p2), %s214_s8, 512, %s216_s11, %s203_s12, %s877_s1, %s877_s1, %s878_s2  }
  0x2b   : > { %s230_s25 = scalar_lea.sflag [#allocation3], %s1010_s22  ;;  %s1014_s29 = scalar_lea.vmem [#allocation2], %s576_s21 }
  0x2c   : > { %832 = dma.done.wait (%p954_p7), %s230_s25, 512  }
  0x2d   : > { %834 = vsyncadd (%p954_p7), %s230_s25, 4294966784 }
  0x2e   : > { %836 = dma.done.wait (%p944_p3), [#allocation5], 32  }
  0x2f   : > { %838 = vsyncadd (%p944_p3), [#allocation5], 4294967264 }
  0x30   : > { %840 = dma.done.wait (%p944_p3), [#allocation8], 32  }
  0x31   : > { %842 = vsyncadd (%p944_p3), [#allocation8], 4294967264 }
  0x32   : > { %249 = sfence }
  0x33   : > { %s1029_s1 = sshll.u32 %s865_s18, 7  ;;  %v275_v2 = vld [vmem:[%s1014_s29] sm:$0xff]  ;;  %v581_v5 = vld [vmem:[%s1014_s29 + $0x8] sm:$0xff]  ;;  %v582_v6 = vld [vmem:[%s1014_s29 + $0x10] sm:$0xff] }
  0x34   : > { %s1032_s2 = sld [smem:[#allocation7 + %s1029_s1]]  ;;  %s1162_s23 = sadd.s32 1, %s1029_s1  ;;  %v583_v10 = vld [vmem:[%s1014_s29 + $0x18] sm:$0xff] }
  0x35   : > { %s1161_s24 = sadd.s32 2, %s1029_s1  ;;  %s287_s26 = sld [smem:[#allocation7 + %s1162_s23]] }
  0x36   : > { %s296_s6 = sadd.s32 3, %s1029_s1  ;;  %s1041_s10 = sld [smem:[#allocation7 + %s1161_s24]] }
  0x37   : > { %s1165_s14 = sadd.s32 4, %s1029_s1  ;;  %s1044_s30 = sld [smem:[#allocation7 + %s296_s6]] }
  0x38   : > { %s1166_s7 = sadd.s32 5, %s1029_s1  ;;  %s302_s8 = sld [smem:[#allocation7 + %s1165_s14]] }
  0x39   : > { %s310_s5 = sadd.s32 6, %s1029_s1  ;;  %s306_s11 = sld [smem:[#allocation7 + %s1166_s7]] }
  0x3a   : > { %s315_s12 = sadd.s32 7, %s1029_s1  ;;  %s320_s21 = sadd.s32 8, %s1029_s1  ;;  %v284_v0 = vstv %s1032_s2 }
  0x3b   : > { %s1056_s25 = sld [smem:[#allocation7 + %s310_s5]]  ;;  %s324_s24 = sadd.s32 9, %s1029_s1  ;;  %v288_v1 = vstv %s287_s26  ;;  %v285_v7 = vmul.f32 %v284_v0, %v275_v2 }
  0x3c   : > { %s321_s23 = sld [smem:[#allocation7 + %s320_s21]]  ;;  %s329_s0 = sadd.s32 10, %s1029_s1  ;;  %v289_v8 = vmul.f32 %v581_v5, %v288_v1  ;;  %v293_v15 = vstv %s1041_s10 }
  0x3d   : > { %s325_s6 = sld [smem:[#allocation7 + %s324_s24]]  ;;  %s334_s13 = sadd.s32 11, %s1029_s1  ;;  %v294_v24 = vmul.f32 %v582_v6, %v293_v15  ;;  %v298_v27 = vstv %s1044_s30 }
  0x3e   : > { %s330_s19 = sld [smem:[#allocation7 + %s329_s0]]  ;;  %v303_v3 = vstv %s302_s8  ;;  %s580_s24 = sshll.u32 %s1010_s22, 3  ;;  %v290_v23 = vadd.f32 %v289_v8, %v285_v7  ;;  %v299_v32 = vmul.f32 %v583_v10, %v298_v27 }
  0x3f   : > { %s335_s14 = sld [smem:[#allocation7 + %s334_s13]]  ;;  %v307_v4 = vstv %s306_s11  ;;  %v304_v11 = vmul.f32 %v303_v3, %v275_v2  ;;  %s1182_s13 = sadd.s32 1, %s1029_s1 }
  0x40   : > { %s1063_s7 = sld [smem:[#allocation7 + %s315_s12]]  ;;  %v308_v12 = vmul.f32 %v581_v5, %v307_v4  ;;  %s1184_s10 = sadd.s32 5, %s1029_s1  ;;  %v295_v31 = vadd.f32 %v294_v24, %v290_v23 }
  0x41   : > { %v312_v16 = vstv %s1056_s25  ;;  %s1072_s0 = sld [smem:[#allocation6 + %s1029_s1]]  ;;  %s592_s8 = sshll.u32 %s865_s18, 3 }
  0x42   : > { %v322_v9 = vstv %s321_s23  ;;  %v309_v25 = vadd.f32 %v308_v12, %v304_v11  ;;  %v313_v26 = vmul.f32 %v582_v6, %v312_v16  ;;  %s1076_s29 = sld [smem:[#allocation6 + %s1182_s13]]  ;;  %s274_s23 = scalar_lea.vmem [#allocation10], %s580_s24  ;;  %v300_v37 = vadd.f32 %v299_v32, %v295_v31 }
  0x43   : > { %v323_v13 = vmul.f32 %v322_v9, %v275_v2  ;;  %v326_v14 = vstv %s325_s6  ;;  %s425_s26 = sshll.u32 %s274_s23, 4  ;;  %s1185_s11 = sadd.s32 2, %s1029_s1  ;;  %s426_s26 = int_to_ptr.vmem [resolvable:$true] %s425_s26 }
  0x44   : > { %v327_v17 = vmul.f32 %v581_v5, %v326_v14  ;;  %v331_v18 = vstv %s330_s19  ;;  %s1183_s19 = sadd.s32 4, %s1029_s1  ;;  %s1091_s12 = sld [smem:[#allocation6 + %s1185_s11]]  ;;  %v314_v33 = vadd.f32 %v313_v26, %v309_v25 }
  0x45   : > { %v332_v19 = vmul.f32 %v582_v6, %v331_v18  ;;  %v336_v20 = vstv %s335_s14  ;;  %s1082_s2 = sld [smem:[#allocation6 + %s1183_s19]]  ;;  %s423_s30 = scalar_lea.hbm %s1160_s4, %s592_s8 }
  0x46   : > { %v328_v21 = vadd.f32 %v327_v17, %v323_v13  ;;  %v337_v22 = vmul.f32 %v583_v10, %v336_v20  ;;  %v317_v28 = vstv %s1063_s7  ;;  %s1086_s14 = sld [smem:[#allocation6 + %s1184_s10]]  ;;  %s427_s7 = sshll.u32 %s423_s30, 4  ;;  %s428_s7 = int_to_ptr.hbm [resolvable:$true] %s427_s7 }
  0x47   : > { %v318_v34 = vmul.f32 %v583_v10, %v317_v28  ;;  %s1098_s6 = sld [smem:[#allocation6 + %s310_s5]]  ;;  %s394_s24 = scalar_lea.sflag [#allocation11], %s1010_s22 }
  0x48   : > { %v333_v29 = vadd.f32 %v332_v19, %v328_v21  ;;  %s765_s13 = sshra.s32 %s428_s7, 4  ;;  %s771_s11 = scalar_lea.hbm %s1160_s4, 16  ;;  %s766_s13 = int_to_ptr.hbm [resolvable:$true] %s765_s13 }
  0x49   : > { %v319_v38 = vadd.f32 %v318_v34, %v314_v33  ;;  %s767_s19 = scalar_lea.hbm %s766_s13, 8  ;;  %p772_p11 = scmp.lt.s32.totalorder %s766_s13, %s1160_s4 }
  0x4a   : > { %v338_v30 = vadd.f32 %v337_v22, %v333_v29  ;;  %p768_p3 = scmp.ne.s32.totalorder %s766_s13, %s767_s19  ;;  %p773_p12 = scmp.lt.s32.totalorder %s771_s11, %s767_s19 }
  0x4c   : > { %v339_v35 = vmax.f32 %v338_v30, 1.1920929e-07  ;;  %p769_p7 = pnand %p768_p3, %p958_p8  ;;  %p774_p0 = por %p773_p12, %p772_p11 }
  0x4e   : > { %v340_v36 = vmax.f32 %v339_v35, 0.1  ;;  %387 = vst [vmem:[%s274_s23] sm:$0xff] %v339_v35  ;;  %p770_p10 = pneg %p769_p7 }
  0x50   : > { %p775_p1 = pnand %p774_p0, %p770_p10 }
  0x52   : > { %778 = shalt.err (!%p775_p1)
}
  0x53   : > { %608 = dma.vmem_to_hbm [thread:$0]  (%p958_p8), %s426_s26, 128, %s428_s7, %s394_s24   ;;  %689 = vrcp.f32 %v340_v36  ;;  %v357_v39 = vstv %s1072_s0  ;;  %v360_v40 = vstv %s1076_s29  ;;  %v369_v41 = vstv %s1082_s2 }
  0x54   : > { %v372_v42 = vstv %s1086_s14  ;;  %v358_v43 = vmul.f32 %v357_v39, %v300_v37  ;;  %v361_v44 = vmul.f32 %v360_v40, %v319_v38  ;;  %v370_v45 = vmul.f32 %v369_v41, %v300_v37  ;;  %s579_s5 = sshll.u32 %s1010_s22, 4  ;;  %s596_s0 = sshll.u32 %s865_s18, 4 }
  0x55   : > { %v373_v46 = vmul.f32 %v372_v42, %v319_v38  ;;  %v364_v47 = vstv %s1091_s12  ;;  %v376_v48 = vstv %s1098_s6  ;;  %v352_v52 = vand.u32 2147483648, %v340_v36  ;;  %s406_s23 = scalar_lea.hbm %s1159_s3, %s596_s0  ;;  %s267_s26 = scalar_lea.vmem [#allocation9], %s579_s5 }
  0x56   : > { %v362_v51 = vadd.f32 %v361_v44, %v358_v43  ;;  %v365_v53 = vmul.f32 %v364_v47, %v338_v30  ;;  %v377_v55 = vmul.f32 %v376_v48, %v338_v30  ;;  %vm346_vm0 = vweird.f32 %v340_v36  ;;  %s407_s14 = sshll.u32 %s267_s26, 4  ;;  %s409_s12 = sshll.u32 %s406_s23, 4  ;;  %s408_s14 = int_to_ptr.vmem [resolvable:$true] %s407_s14  ;;  %s410_s12 = int_to_ptr.hbm [resolvable:$true] %s409_s12 }
  0x57   : > { %v374_v54 = vadd.f32 %v373_v46, %v370_v45  ;;  %v350_v57 = vand.u32 2147483647, %v340_v36  ;;  %v353_v59 = vor.u32 1.1754944e-38, %v352_v52  ;;  %s389_s18 = scalar_lea.sflag [#allocation4], %s1010_s22  ;;  %s793_s25 = sshra.s32 %s410_s12, 4  ;;  %s794_s25 = int_to_ptr.hbm [resolvable:$true] %s793_s25 }
  0x58   : > { %v366_v61 = vadd.f32 %v365_v53, %v362_v51  ;;  %s795_s30 = scalar_lea.hbm %s794_s25, 16  ;;  %s799_s24 = scalar_lea.hbm %s1159_s3, 32 }
  0x59   : > { %v690_v49 = vpop.eup %689  ;;  %vm351_vm3 = vcmp.eq.f32.partialorder %v350_v57, 8.507059e+37  ;;  %v378_v62 = vadd.f32 %v377_v55, %v374_v54  ;;  %p796_p2 = scmp.ne.s32.totalorder %s794_s25, %s795_s30  ;;  %p800_p5 = scmp.lt.s32.totalorder %s794_s25, %s1159_s3 }
  0x5a   : > { %v342_v50 = vmul.f32 %v690_v49, %v340_v36  ;;  %vm347_vm1 = vweird.f32 %v690_v49  ;;  %p801_p3 = scmp.lt.s32.totalorder %s799_s24, %s795_s30 }
  0x5b   : > { %vm348_vm2 = vmor %vm346_vm0, %vm347_vm1  ;;  %p797_p4 = pnand %p796_p2, %p958_p8 }
  0x5c   : > { %v343_v56 = vsub.f32 1.0, %v342_v50  ;;  %p802_p7 = por %p801_p3, %p800_p5 }
  0x5d   : > { %p798_p6 = pneg %p797_p4 }
  0x5e   : > { %v344_v58 = vmul.f32 %v690_v49, %v343_v56 }
  0x5f   : > { %p803_p10 = pnand %p802_p7, %p798_p6 }
  0x60   : > { %v345_v60 = vadd.f32 %v690_v49, %v344_v58 }
  0x62   : > { %v349_v63 = vsel %vm348_vm2, %v690_v49, %v345_v60 }
  0x63   : > { %v354_v0 = vsel %vm351_vm3, %v353_v59, %v349_v63 }
  0x64   : > { %v367_v1 = vmul.f32 %v366_v61, %v354_v0  ;;  %v379_v2 = vmul.f32 %v378_v62, %v354_v0 }
  0x66   : > { %v380_v3 = vmul.f32 0.13333334, %v367_v1  ;;  %v383_v4 = vmul.f32 0.13333334, %v379_v2 }
  0x68   : > { %v585_v5 = vadd.f32 -1.0, %v380_v3  ;;  %v586_v6 = vadd.f32 -1.0, %v383_v4 }
  0x6a   : > { %382 = vst [vmem:[%s267_s26] sm:$0xff] %v585_v5 }
  0x6b   : > { %587 = vst [vmem:[%s267_s26 + $0x8] sm:$0xff] %v586_v6 }
  0x6c   : > { %806 = shalt.err (!%p803_p10)
}
  0x6d   : > { %s879_s22 = smov 128   ;;  %s880_s10 = smov 8  }
  0x6e   : > { %607 = dma.vmem_to_hbm [thread:$0]  (%p958_p8), %s408_s14, 256, %s410_s12, %s389_s18, %s879_s22, %s879_s22, %s880_s10  }
  0x6f PF: > { %s439_s8 = sand.u32 1, %s853_s15   ;;  %p623_p11 = pnand %p571_p13, %p962_p9 }
  0x70   : > { %s440_s11 = scalar_lea.sflag [#allocation4], %s439_s8 }
  0x71   : > { %p624_p12 = pneg %p623_p11 }
  0x73   : > { %844 = dma.done.wait (%p624_p12), %s440_s11, 256  }
  0x74   : > { %846 = vsyncadd (%p624_p12), %s440_s11, 4294967040  ;;  %s450_s21 = scalar_lea.sflag [#allocation11], %s439_s8 }
  0x75   : > { %848 = dma.done.wait (%p624_p12), %s450_s21, 128  }
  0x76   : > { %850 = vsyncadd (%p624_p12), %s450_s21, 4294967168  ;;  %s26_s20 = sadd.s32 1, %s873_s20   ;;  %s1186_s18 = sld [smem:[#allocation17_spill]] }
  0x77   : > { %p23_p0 = scmp.ge.s32.totalorder %s26_s20, 4   ;;  %s1187_s19 = sld [smem:[#allocation18_spill]] }
  0x78   : > { %s1188_s15 = smov %s857_s16  ;;  %s1189_s16 = smov %s861_s17 }
  0x79   : > { %s1190_s17 = smov %s1003_s9  ;;  %25 = sbr.rel (!%p23_p0) target bundleno = 14 (0xe), region = 107 }
  0x7e   :  { %456 = vsyncpa [#allocation3], 1 }
  0x7f   :  { %458 = vsyncpa [#allocation3 + $0x1], 1 }
  0x80   :  { %459 = vsyncpa [#allocation4], 1 }
  0x81   :  { %461 = vsyncpa [#allocation4 + $0x1], 1 }
  0x82   :  { %462 = vsyncpa [#allocation11], 1 }
  0x83   :  { %464 = vsyncpa [#allocation11 + $0x1], 1 }
  0x84   :  { %465 = vsyncpa [#allocation5], 1 }
  0x85   :  { %467 = vsyncpa [#allocation5 + $0x1], 1 }
  0x86   :  { %468 = vsyncpa [#allocation8], 1 }

</bundles_post_ra>
